<compile_context>
chip_gen: v7x
topology: tpu7x:2x2x1
jax: 0.10.0
libtpu: 0.0.40
codegen_flags: <defaults>
</compile_context>

<pallas_src>
import math

import jax
import jax.numpy as jnp
from jax.experimental import pallas as pl
from jax.experimental.pallas import tpu as pltpu


def _make_dma_copy_kernel(chunk_bounds):
    """HBM->HBM copy kernel: grid step c DMAs rows [lo_c, hi_c) of the slab."""

    def kernel(x_hbm, o_hbm, sem):
        step = pl.program_id(0)
        for c, (lo, hi) in enumerate(chunk_bounds):
            @pl.when(step == c)
            def _(lo=lo, size=hi - lo):
                cp = pltpu.make_async_copy(
                    x_hbm.at[pl.ds(lo, size)],
                    o_hbm.at[pl.ds(lo, size)],
                    sem,
                )
                cp.start()
                cp.wait()

    return kernel


def _dma_flat_copy(slab: jax.Array, n_chunks: int,
                   bytes_accessed: int) -> jax.Array:
    rows, cols = slab.shape
    # Static, non-empty, contiguous row chunks (last one may be smaller).
    n_chunks = max(1, min(n_chunks, rows))
    chunk = pl.cdiv(rows, n_chunks)
    n_chunks = pl.cdiv(rows, chunk)          # drop would-be-empty tail chunks
    bounds = tuple((c * chunk, min((c + 1) * chunk, rows))
                   for c in range(n_chunks))

    return pl.pallas_call(
        _make_dma_copy_kernel(bounds),
        out_shape=jax.ShapeDtypeStruct((rows, cols), slab.dtype),
        grid=(n_chunks,),
        in_specs=[pl.BlockSpec(memory_space=pl.ANY)],
        out_specs=pl.BlockSpec(memory_space=pl.ANY),
        scratch_shapes=[pltpu.SemaphoreType.DMA(())],
        compiler_params=pltpu.CompilerParams(
            # "parallel": v7x's two TensorCores each issue the DMA for half
            # the slab; harmless no-op on single-TC v5e/v6e.
            dimension_semantics=("parallel",),
            has_side_effects=True,
        ),
        cost_estimate=pl.CostEstimate(
            flops=0, transcendentals=0, bytes_accessed=bytes_accessed),
    )(slab)


@jax.jit
def flatten(x: jax.Array) -> jax.Array:
    """Pallas equivalent of torch `x.view(x.size(0), -1)` (contiguous NCHW)."""
    n = x.shape[0]
    d = math.prod(x.shape[1:])
    total = n * d
    if total == 0:                            # degenerate: nothing to move
        return x.reshape(n, d)

    itemsize = jnp.dtype(x.dtype).itemsize
    bytes_accessed = 2 * total * itemsize     # one HBM read + one HBM write

    # 2D slab view of the flattened row-major element stream.  Both reshapes
    # below are row-major regroupings (metadata-only / bitcast under jit), so
    # element order is identical to torch's contiguous `x.view(n, -1)` and
    # copying the slab then re-viewing it as (n, d) is exact.  Prefer many
    # narrow rows so the copy splits evenly into two contiguous chunks; the
    # DMA engine does not care about the column width.
    if total % 128 == 0 and total >= 256:
        rows, cols = total // 128, 128
    else:
        rows, cols = n, d                     # ragged sizes: DMA handles them

    # Two chunks -> 2-step grid (one per v7x TensorCore); one chunk if the
    # slab has a single row.
    n_chunks = 2 if rows >= 2 else 1

    slab = x.reshape(rows, cols)
    out = _dma_flat_copy(slab, n_chunks, bytes_accessed)
    return out.reshape(n, d)


if __name__ == "__main__":
    key = jax.random.PRNGKey(0)
    k1, k2, k3 = jax.random.split(key, 3)

    # Primary: small NCHW feature map (N=2, C=4, H=16, W=16).
    x = jax.random.normal(k1, (2, 4, 16, 16), dtype=jnp.float32)
    out = jax.block_until_ready(flatten(x))
    ref = x.reshape(x.shape[0], -1)
    assert out.shape == (2, 4 * 16 * 16), out.shape
    assert out.dtype == x.dtype, out.dtype
    assert jnp.array_equal(out, ref), "mismatch vs. reference flatten (primary)"

    # Ragged flattened dim (C*H*W = 147, total = 294, not a multiple of 128).
    xr = jax.random.normal(k2, (2, 3, 7, 7), dtype=jnp.float32)
    outr = jax.block_until_ready(flatten(xr))
    assert jnp.array_equal(outr, xr.reshape(2, -1)), "mismatch (ragged path)"

    # Larger input (4 MiB) -> two multi-MiB DMA chunks on the parallel grid.
    xl = jax.random.normal(k3, (16, 16, 64, 64), dtype=jnp.float32)
    outl = jax.block_until_ready(flatten(xl))
    assert jnp.array_equal(outl, xl.reshape(16, -1)), "mismatch (large path)"

    # Sub-32-bit dtype (bf16): DMA path is dtype/packing agnostic.
    xb = jax.random.normal(k1, (2, 4, 16, 16), dtype=jnp.bfloat16)
    outb = jax.block_until_ready(flatten(xb))
    assert jnp.array_equal(outb, xb.reshape(2, -1)), "mismatch (bf16 path)"

    print("KERNEL_OK")
</pallas_src>

<mosaic_0001>
module attributes {stable_mosaic.version = 11 : i64} {
  func.func @kernel(%arg0: i32, %arg1: memref<16x128xf32, #tpu.memory_space<any>>, %arg2: memref<16x128xf32, #tpu.memory_space<any>>, %arg3: memref<!tpu.dma_semaphore, #tpu.memory_space<semaphore_mem>>) attributes {dimension_semantics = [#tpu.dimension_semantics<parallel>], iteration_bounds = array<i64: 2>, scalar_prefetch = 0 : i64, scratch_operands = 1 : i64, tpu.core_type = #tpu.core_type<tc>, window_params = [{}, {}]} {
    %c0_i32 = arith.constant 0 : i32
    %0 = arith.cmpi eq, %arg0, %c0_i32 : i32
    %1 = arith.extui %0 : i1 to i32
    %c0_i32_0 = arith.constant 0 : i32
    %2 = arith.cmpi ne, %1, %c0_i32_0 : i32
    scf.if %2 {
      %c0_i32_2 = arith.constant 0 : i32
      %c0_i32_3 = arith.constant 0 : i32
      %6 = tpu.memref_slice %arg1[%c0_i32_2, %c0_i32_3] : memref<16x128xf32, #tpu.memory_space<any>> -> memref<8x128xf32, #tpu.memory_space<any>>
      %c0_i32_4 = arith.constant 0 : i32
      %c0_i32_5 = arith.constant 0 : i32
      %7 = tpu.memref_slice %arg2[%c0_i32_4, %c0_i32_5] : memref<16x128xf32, #tpu.memory_space<any>> -> memref<8x128xf32, #tpu.memory_space<any>>
      tpu.enqueue_dma source(%6 : memref<8x128xf32, #tpu.memory_space<any>>) target(%7 : memref<8x128xf32, #tpu.memory_space<any>>) target_semaphore(%arg3 : memref<!tpu.dma_semaphore, #tpu.memory_space<semaphore_mem>>)
      %c0_i32_6 = arith.constant 0 : i32
      %c0_i32_7 = arith.constant 0 : i32
      %8 = tpu.memref_slice %arg1[%c0_i32_6, %c0_i32_7] : memref<16x128xf32, #tpu.memory_space<any>> -> memref<8x128xf32, #tpu.memory_space<any>>
      %c0_i32_8 = arith.constant 0 : i32
      %c0_i32_9 = arith.constant 0 : i32
      %9 = tpu.memref_slice %arg2[%c0_i32_8, %c0_i32_9] : memref<16x128xf32, #tpu.memory_space<any>> -> memref<8x128xf32, #tpu.memory_space<any>>
      tpu.wait_dma2 semaphore(%arg3 : memref<!tpu.dma_semaphore, #tpu.memory_space<semaphore_mem>>) src(%8 : memref<8x128xf32, #tpu.memory_space<any>>) dst(%9 : memref<8x128xf32, #tpu.memory_space<any>>)
    } else {
    }
    %c1_i32 = arith.constant 1 : i32
    %3 = arith.cmpi eq, %arg0, %c1_i32 : i32
    %4 = arith.extui %3 : i1 to i32
    %c0_i32_1 = arith.constant 0 : i32
    %5 = arith.cmpi ne, %4, %c0_i32_1 : i32
    scf.if %5 {
      %c8_i32 = arith.constant 8 : i32
      %c0_i32_2 = arith.constant 0 : i32
      %6 = tpu.memref_slice %arg1[%c8_i32, %c0_i32_2] : memref<16x128xf32, #tpu.memory_space<any>> -> memref<8x128xf32, #tpu.memory_space<any>>
      %c8_i32_3 = arith.constant 8 : i32
      %c0_i32_4 = arith.constant 0 : i32
      %7 = tpu.memref_slice %arg2[%c8_i32_3, %c0_i32_4] : memref<16x128xf32, #tpu.memory_space<any>> -> memref<8x128xf32, #tpu.memory_space<any>>
      tpu.enqueue_dma source(%6 : memref<8x128xf32, #tpu.memory_space<any>>) target(%7 : memref<8x128xf32, #tpu.memory_space<any>>) target_semaphore(%arg3 : memref<!tpu.dma_semaphore, #tpu.memory_space<semaphore_mem>>)
      %c8_i32_5 = arith.constant 8 : i32
      %c0_i32_6 = arith.constant 0 : i32
      %8 = tpu.memref_slice %arg1[%c8_i32_5, %c0_i32_6] : memref<16x128xf32, #tpu.memory_space<any>> -> memref<8x128xf32, #tpu.memory_space<any>>
      %c8_i32_7 = arith.constant 8 : i32
      %c0_i32_8 = arith.constant 0 : i32
      %9 = tpu.memref_slice %arg2[%c8_i32_7, %c0_i32_8] : memref<16x128xf32, #tpu.memory_space<any>> -> memref<8x128xf32, #tpu.memory_space<any>>
      tpu.wait_dma2 semaphore(%arg3 : memref<!tpu.dma_semaphore, #tpu.memory_space<semaphore_mem>>) src(%8 : memref<8x128xf32, #tpu.memory_space<any>>) dst(%9 : memref<8x128xf32, #tpu.memory_space<any>>)
    } else {
    }
    return
  }
}

</mosaic_0001>

<bundles_post_ra>
// kernel: flatten.1
= control target key start
LH: loop header
LB: loop body
LE: loop exit
PB: predicated region body
PF: predicated region fallthrough
CT: control target
= control target key end

     0   :  { %s163_s6 = smov 0   ;;  %s189_s0 = inlined_call_operand.vmem [shape: f32[16,128], index: 0, kind: input, shape index: {}]   ;;  %s190_s1 = inlined_call_operand.vmem [shape: f32[16,128], index: 1, kind: output, shape index: {}]  }
   0x1 LB: > { %p140_p0 = scmp.ne.s32.totalorder %s165_s6, 0  ;;  %s165_s6 = sphi %s163_s6, %s11_s6  }
   0x2   : > { %v49_v0 = vld [vmem:[%s189_s0] sm:$0xff] (!%p140_p0) }
   0x3   : > { %16 = sbr.rel (%p140_p0) target bundleno = 13 (0xd), region = 12  ;;  %50 = vst [vmem:[%s190_s1] sm:$0xff] (!%p140_p0), %v49_v0 }
   0xa   : > { %58 = vsyncadd [#allocation2], 128 }
   0xb   : > { %159 = dma.done.wait [#allocation2], 128 }
   0xc   : > { %160 = vsyncadd [#allocation2], 4294967168 }
   0xd PF: > { %p141_p1 = scmp.ne.s32.totalorder %s165_s6, 1 }
   0xe   : > { %v142_v1 = vld [vmem:[%s189_s0 + $0x8] sm:$0xff] (!%p141_p1) }
   0xf   : > { %65 = sbr.rel (%p141_p1) target bundleno = 25 (0x19), region = 50  ;;  %143 = vst [vmem:[%s190_s1 + $0x8] sm:$0xff] (!%p141_p1), %v142_v1 }
  0x16   : > { %109 = vsyncadd [#allocation2], 128 }
  0x17   : > { %161 = dma.done.wait [#allocation2], 128 }
  0x18   : > { %162 = vsyncadd [#allocation2], 4294967168 }
  0x19 PF: > { %s11_s6 = sadd.s32 1, %s165_s6  }
  0x1a   : > { %p8_p2 = scmp.ge.s32.totalorder %s11_s6, 2  }
  0x1c   :  { %10 = sbr.rel (!%p8_p2) target bundleno = 1 (0x1), region = 113 }
  0x23   :  { %113 = vsyncmov [#allocation2] }
  0x26   :  { %s114_s15 = vpop.sfrf %113 }
  0x27   :  { %p146_p3 = scmp.ne.s32.totalorder %s114_s15, 0 }
  0x29   :  { %118 = shalt.err (%p146_p3)  }

</bundles_post_ra>
